<compile_context>
chip_gen: v6e
topology: v6e:2x2x1
jax: 0.10.0
libtpu: 0.0.40
codegen_flags: <defaults>
</compile_context>

<pallas_src>
import math

import jax
import jax.numpy as jnp
from jax.experimental import pallas as pl
from jax.experimental.pallas import tpu as pltpu


# ---------------------------------------------------------------------------
# Kernel
# ---------------------------------------------------------------------------
def _adaptive_linear_kernel(idx_ref, x_ref, w_ref, b_ref, o_ref, acc_ref):
    # idx_ref: scalar-prefetch (SMEM) indices; consumed by the index_maps.
    # x_ref: (tm, tk)   w_ref: (tk, tn)   b_ref: (1, tn)
    # o_ref: (tm, tn)   acc_ref: (tm, tn) f32 scratch
    k = pl.program_id(2)

    @pl.when(k == 0)
    def _init():
        acc_ref[...] = jnp.zeros_like(acc_ref)

    acc_ref[...] += jnp.dot(
        x_ref[...], w_ref[...], preferred_element_type=jnp.float32
    )

    @pl.when(k == pl.num_programs(2) - 1)
    def _finalize():
        o_ref[...] = (
            acc_ref[...] + b_ref[...].astype(jnp.float32)
        ).astype(o_ref.dtype)


# ---------------------------------------------------------------------------
# Tile / VMEM helpers
# ---------------------------------------------------------------------------
def _round_up(x, m):
    return ((x + m - 1) // m) * m


def _pick_tile(dim, target, align):
    """Largest tile <= target that is a multiple of `align` and evenly divides
    `dim`.  Full-dim fallback only fires for dims <= target (legal full-extent
    blocks that fit the per-gen VMEM budget by construction) — larger dims are
    pre-padded in the wrapper so an aligned divisor always exists."""
    if dim <= target:
        return dim
    t = (target // align) * align
    while t >= align:
        if dim % t == 0:
            return t
        t -= align
    return dim  # safety net; unreachable after wrapper-side padding


def _tpu_vmem_bytes():
    try:
        return int(pltpu.get_tpu_info().vmem_capacity_bytes)
    except Exception:
        return 64 * 1024 * 1024  # conservative default (v7x-sized)


def _tile_targets(vmem_bytes):
    """(tm, tn, tk) targets sized per generation's physical VMEM."""
    if vmem_bytes >= 96 * 1024 * 1024:
        # v5e / v6e: 128 MiB VMEM — big, 256-aligned K/N tiles for the MXU.
        return 512, 1024, 1024
    # v7x: 64 MiB VMEM — moderately large tiles, rely on 3.2 TB/s HBM.
    return 512, 512, 512


# ---------------------------------------------------------------------------
# Wrapper
# ---------------------------------------------------------------------------
def adaptive_linear_with_channel(x, weight, bias, indices, *, compute_dtype=None):
    """Pallas implementation of AdaptiveLinearWithChannel.forward.

    compute_dtype: optionally cast x/weight (e.g. jnp.bfloat16 on v6e/v7x) for
    the MXU; accumulation and bias add stay in f32, output keeps x's dtype.
    For repeated calls, pre-cast the weight tensor once outside this wrapper.
    """
    B, N, I = x.shape
    C, I_w, O = weight.shape
    assert I == I_w
    assert bias.shape == (C, 1, O)
    out_dtype = x.dtype
    # Clamp out-of-range indices (gather bounds are DMA-level only).
    indices = jnp.clip(indices.astype(jnp.int32), 0, C - 1)

    if compute_dtype is not None:
        x = x.astype(compute_dtype)
        weight = weight.astype(compute_dtype)

    in_itemsize = jnp.dtype(x.dtype).itemsize
    # Sublane-packing alignment for the M dim (8 f32, 16 bf16, 32 int8/fp8).
    m_align = {4: 8, 2: 16, 1: 32}.get(in_itemsize, 8)

    vmem_bytes = _tpu_vmem_bytes()
    tm_target, tn_target, tk_target = _tile_targets(vmem_bytes)

    # ---- padding -----------------------------------------------------------
    # Output features: always a multiple of 128 -> unmasked, lane-dense vst.
    Op = _round_up(O, 128)
    # Reduction dim: pad to 128-multiple only when a full-dim fallback would be
    # both unaligned and larger than the per-gen tile target (v7x VMEM guard).
    Ip = I if (I % 128 == 0 or I <= tk_target) else _round_up(I, 128)
    # Rows: sublane-packing alignment for the compute dtype.
    Np = _round_up(N, m_align)

    if Op != O:
        weight = jnp.pad(weight, ((0, 0), (0, 0), (0, Op - O)))
        bias = jnp.pad(bias, ((0, 0), (0, 0), (0, Op - O)))
    if Ip != I:
        x = jnp.pad(x, ((0, 0), (0, 0), (0, Ip - I)))
        weight = jnp.pad(weight, ((0, 0), (0, Ip - I), (0, 0)))
    if Np != N:
        x = jnp.pad(x, ((0, 0), (0, Np - N), (0, 0)))

    tm = _pick_tile(Np, tm_target, m_align)   # rows            (sublane-aligned)
    tn = _pick_tile(Op, tn_target, 128)       # output features (lane-aligned)
    tk = _pick_tile(Ip, tk_target, 128)       # reduction       (lane-aligned)

    n_m = Np // tm
    n_n = Op // tn
    n_k = Ip // tk

    # Fold (batch, m-tile) into ONE leading "parallel" axis so both v7x
    # TensorCores get work even when B == 1 or N//tm == 1.
    grid = (B * n_m, n_n, n_k)

    if n_m == 1:
        b_of = lambda t: t
        m_of = lambda t: 0
    else:
        b_of = lambda t: t // n_m
        m_of = lambda t: t % n_m

    x_map = lambda t, n, k, idx: (b_of(t), m_of(t), k)
    w_map = lambda t, n, k, idx: (idx[b_of(t)], k, n)   # gather via scalar prefetch
    b_map = lambda t, n, k, idx: (idx[b_of(t)], 0, n)
    o_map = lambda t, n, k, idx: (b_of(t), m_of(t), n)  # invariant to k -> accumulator

    grid_spec = pltpu.PrefetchScalarGridSpec(
        num_scalar_prefetch=1,          # `indices` lands in SMEM
        grid=grid,
        in_specs=[
            pl.BlockSpec((pl.Squeezed(), tm, tk), x_map),
            pl.BlockSpec((pl.Squeezed(), tk, tn), w_map),
            pl.BlockSpec((pl.Squeezed(), 1, tn), b_map),
        ],
        out_specs=pl.BlockSpec((pl.Squeezed(), tm, tn), o_map),
        scratch_shapes=[pltpu.VMEM((tm, tn), jnp.float32)],
    )

    w_itemsize = jnp.dtype(weight.dtype).itemsize
    b_itemsize = jnp.dtype(bias.dtype).itemsize
    out_itemsize = jnp.dtype(out_dtype).itemsize
    cost = pl.CostEstimate(
        flops=2 * B * Np * Ip * Op,
        transcendentals=0,
        bytes_accessed=int(
            B * Np * Ip * in_itemsize * n_n        # x, replayed once per n-tile
            + B * n_m * Ip * Op * w_itemsize       # gathered weight slab per (b, m-tile)
            + B * n_m * Op * b_itemsize            # bias per (b, m-tile)
            + B * Np * Op * out_itemsize           # output writeback
        ),
    )

    out = pl.pallas_call(
        _adaptive_linear_kernel,
        out_shape=jax.ShapeDtypeStruct((B, Np, Op), out_dtype),
        grid_spec=grid_spec,
        compiler_params=pltpu.CompilerParams(
            # (b,m) and n tiles are independent -> shard across cores on v7x;
            # K is the reduction -> must stay sequential ("arbitrary").
            dimension_semantics=("parallel", "parallel", "arbitrary"),
            vmem_limit_bytes=max(32 * 1024 * 1024, (vmem_bytes * 3) // 4),
        ),
        cost_estimate=cost,
    )(indices, x, weight, bias)

    if Np != N or Op != O:
        out = out[:, :N, :O]
    return out


# ---------------------------------------------------------------------------
# Parameter init matching the PyTorch module's reset_parameters
# ---------------------------------------------------------------------------
def init_params(key, channel_size, input_size, output_size):
    kw, kb = jax.random.split(key)
    # kaiming_uniform_(weight, a=sqrt(3)):
    #   fan_in = input_size * output_size ; bound = sqrt(1.5 / fan_in)
    fan_in = input_size * output_size
    w_bound = math.sqrt(1.5 / fan_in)
    weight = jax.random.uniform(
        kw, (channel_size, input_size, output_size),
        minval=-w_bound, maxval=w_bound, dtype=jnp.float32)
    # bias ~ U(-1/sqrt(fan_in), 1/sqrt(fan_in))
    b_bound = 1.0 / math.sqrt(fan_in)
    bias = jax.random.uniform(
        kb, (channel_size, 1, output_size),
        minval=-b_bound, maxval=b_bound, dtype=jnp.float32)
    return weight, bias


if __name__ == "__main__":
    key = jax.random.PRNGKey(0)
    k_x, k_p, k_i = jax.random.split(key, 3)

    # Small shapes consistent with the module.
    B, N = 2, 16                 # batch, points-per-channel (bmm rows)
    channel_size = 4
    input_size, output_size = 32, 32

    weight, bias = init_params(k_p, channel_size, input_size, output_size)
    x = jax.random.normal(k_x, (B, N, input_size), dtype=jnp.float32)
    indices = jax.random.randint(k_i, (B,), 0, channel_size, dtype=jnp.int32)

    out = adaptive_linear_with_channel(x, weight, bias, indices)
    out = jax.block_until_ready(out)

    # Pure-JAX reference: bmm(x, weight[indices]) + bias[indices]
    ref = jnp.einsum("bni,bio->bno", x, weight[indices]) + bias[indices]
    assert out.shape == (B, N, output_size)
    assert jnp.allclose(out, ref, atol=1e-5, rtol=1e-5), "mismatch vs reference"

    print("KERNEL_OK")
</pallas_src>

<mosaic_0001>
module attributes {stable_mosaic.version = 11 : i64} {
  func.func @_adaptive_linear_kernel(%arg0: i32, %arg1: i32, %arg2: i32, %arg3: memref<2xi32, #tpu.memory_space<smem>>, %arg4: memref<1x16x32xf32, #tpu.memory_space<vmem>>, %arg5: memref<1x32x128xf32, #tpu.memory_space<vmem>>, %arg6: memref<1x1x128xf32, #tpu.memory_space<vmem>>, %arg7: memref<1x16x128xf32, #tpu.memory_space<vmem>>, %arg8: memref<16x128xf32, #tpu.memory_space<vmem>>) attributes {dimension_semantics = [#tpu.dimension_semantics<parallel>, #tpu.dimension_semantics<parallel>, #tpu.dimension_semantics<arbitrary>], iteration_bounds = array<i64: 2, 1, 1>, scalar_prefetch = 1 : i64, scratch_operands = 1 : i64, tpu.core_type = #tpu.core_type<tc>, window_params = [{transform_indices = @transform_0, window_bounds = array<i64: 1, 16, 32>}, {transform_indices = @transform_1, window_bounds = array<i64: 1, 32, 128>}, {transform_indices = @transform_2, window_bounds = array<i64: 1, 1, 128>}, {transform_indices = @transform_3, window_bounds = array<i64: 1, 16, 128>}]} {
    %c0_i32 = arith.constant 0 : i32
    %0 = arith.cmpi eq, %arg2, %c0_i32 : i32
    %1 = arith.extui %0 : i1 to i32
    %c0_i32_0 = arith.constant 0 : i32
    %2 = arith.cmpi ne, %1, %c0_i32_0 : i32
    scf.if %2 {
      %cst_12 = arith.constant 0.000000e+00 : f32
      %14 = vector.broadcast %cst_12 : f32 to vector<16x128xf32>
      %c0_13 = arith.constant 0 : index
      %c0_14 = arith.constant 0 : index
      %15 = vector.load %arg8[%c0_13, %c0_14] : memref<16x128xf32, #tpu.memory_space<vmem>>, vector<16x128xf32>
      tpu.vector_store %arg8[%c0_13, %c0_14], %14 {strides = array<i32>} : memref<16x128xf32, #tpu.memory_space<vmem>>, vector<16x128xf32>,
    } else {
    }
    %c0 = arith.constant 0 : index
    %c0_1 = arith.constant 0 : index
    %3 = vector.load %arg8[%c0, %c0_1] : memref<16x128xf32, #tpu.memory_space<vmem>>, vector<16x128xf32>
    %c0_2 = arith.constant 0 : index
    %c0_3 = arith.constant 0 : index
    %c0_4 = arith.constant 0 : index
    %4 = vector.load %arg4[%c0_2, %c0_3, %c0_4] : memref<1x16x32xf32, #tpu.memory_space<vmem>>, vector<1x16x32xf32>
    %5 = vector.shape_cast %4 : vector<1x16x32xf32> to vector<16x32xf32>
    %c0_5 = arith.constant 0 : index
    %c0_6 = arith.constant 0 : index
    %c0_7 = arith.constant 0 : index
    %6 = vector.load %arg5[%c0_5, %c0_6, %c0_7] : memref<1x32x128xf32, #tpu.memory_space<vmem>>, vector<1x32x128xf32>
    %7 = vector.shape_cast %6 : vector<1x32x128xf32> to vector<32x128xf32>
    %cst = arith.constant dense<0.000000e+00> : vector<16x128xf32>
    %8 = tpu.matmul %5, %7, %cst {dimension_numbers = #tpu.dot_dimension_numbers<[1], [0], [0], [1], [0, 0, 1, 1], [], []>} : vector<16x32xf32>, vector<32x128xf32>, vector<16x128xf32> -> vector<16x128xf32>
    %9 = arith.addf %3, %8 : vector<16x128xf32>
    %c0_8 = arith.constant 0 : index
    %c0_9 = arith.constant 0 : index
    %10 = vector.load %arg8[%c0_8, %c0_9] : memref<16x128xf32, #tpu.memory_space<vmem>>, vector<16x128xf32>
    tpu.vector_store %arg8[%c0_8, %c0_9], %9 {strides = array<i32>} : memref<16x128xf32, #tpu.memory_space<vmem>>, vector<16x128xf32>,
    %c0_i32_10 = arith.constant 0 : i32
    %11 = arith.cmpi eq, %arg2, %c0_i32_10 : i32
    %12 = arith.extui %11 : i1 to i32
    %c0_i32_11 = arith.constant 0 : i32
    %13 = arith.cmpi ne, %12, %c0_i32_11 : i32
    scf.if %13 {
      %c0_12 = arith.constant 0 : index
      %c0_13 = arith.constant 0 : index
      %14 = vector.load %arg8[%c0_12, %c0_13] : memref<16x128xf32, #tpu.memory_space<vmem>>, vector<16x128xf32>
      %c0_14 = arith.constant 0 : index
      %c0_15 = arith.constant 0 : index
      %c0_16 = arith.constant 0 : index
      %15 = vector.load %arg6[%c0_14, %c0_15, %c0_16] : memref<1x1x128xf32, #tpu.memory_space<vmem>>, vector<1x1x128xf32>
      %16 = vector.shape_cast %15 : vector<1x1x128xf32> to vector<1x128xf32>
      %17 = vector.broadcast %16 : vector<1x128xf32> to vector<16x128xf32>
      %18 = arith.addf %14, %17 : vector<16x128xf32>
      %c0_17 = arith.constant 0 : index
      %c0_18 = arith.constant 0 : index
      %c0_19 = arith.constant 0 : index
      %19 = vector.load %arg7[%c0_17, %c0_18, %c0_19] : memref<1x16x128xf32, #tpu.memory_space<vmem>>, vector<1x16x128xf32>
      %20 = vector.shape_cast %19 : vector<1x16x128xf32> to vector<16x128xf32>
      %21 = vector.shape_cast %18 : vector<16x128xf32> to vector<1x16x128xf32>
      tpu.vector_store %arg7[%c0_17, %c0_18, %c0_19], %21 {strides = array<i32>} : memref<1x16x128xf32, #tpu.memory_space<vmem>>, vector<1x16x128xf32>,
    } else {
    }
    return
  }
  func.func @transform_0(%arg0: i32, %arg1: i32, %arg2: i32, %arg3: memref<2xi32, #tpu.memory_space<smem>>) -> (i32, i32, i32) {
    %c0_i32 = arith.constant 0 : i32
    %c0_i32_0 = arith.constant 0 : i32
    return %arg0, %c0_i32, %arg2 : i32, i32, i32
  }
  func.func @transform_1(%arg0: i32, %arg1: i32, %arg2: i32, %arg3: memref<2xi32, #tpu.memory_space<smem>>) -> (i32, i32, i32) {
    %0 = arith.index_cast %arg0 : i32 to index
    %1 = memref.load %arg3[%0] : memref<2xi32, #tpu.memory_space<smem>>
    %c0_i32 = arith.constant 0 : i32
    return %1, %arg2, %arg1 : i32, i32, i32
  }
  func.func @transform_2(%arg0: i32, %arg1: i32, %arg2: i32, %arg3: memref<2xi32, #tpu.memory_space<smem>>) -> (i32, i32, i32) {
    %0 = arith.index_cast %arg0 : i32 to index
    %1 = memref.load %arg3[%0] : memref<2xi32, #tpu.memory_space<smem>>
    %c0_i32 = arith.constant 0 : i32
    %c0_i32_0 = arith.constant 0 : i32
    return %1, %c0_i32, %arg1 : i32, i32, i32
  }
  func.func @transform_3(%arg0: i32, %arg1: i32, %arg2: i32, %arg3: memref<2xi32, #tpu.memory_space<smem>>) -> (i32, i32, i32) {
    %c0_i32 = arith.constant 0 : i32
    %c0_i32_0 = arith.constant 0 : i32
    return %arg0, %c0_i32, %arg1 : i32, i32, i32
  }
}

</mosaic_0001>

<bundles_post_ra>
// kernel: tpu_custom_call.1
= control target key start
LH: loop header
LB: loop body
LE: loop exit
PB: predicated region body
PF: predicated region fallthrough
CT: control target
= control target key end

     0   :  { %s878_s15 = smov [#allocation4]   ;;  %s1197_s0 = inlined_call_operand.hbm [shape: s32[2], index: 0, kind: input, shape index: {}]   ;;  %s1198_s1 = inlined_call_operand.hbm [shape: f32[2,16,32], index: 1, kind: input, shape index: {}]   ;;  %s1199_s2 = inlined_call_operand.hbm [shape: f32[4,32,128], index: 2, kind: input, shape index: {}]   ;;  %s1200_s3 = inlined_call_operand.vmem [shape: f32[4,1,128], index: 3, kind: input, shape index: {}]   ;;  %s1201_s4 = inlined_call_operand.hbm [shape: f32[2,16,128], index: 4, kind: output, shape index: {}]  }
   0x1   :  { %1209 = sst [smem:[#allocation19_spill]] %s1198_s1 }
   0x2   :  { %10 = dma.hbm_to_smem %s1197_s0, 16, %s878_s15, [#allocation3] }
   0x3   :  { %828 = dma.done.wait [#allocation3], 16 }
   0x4   :  { %829 = vsyncadd [#allocation3], 4294967280 }
   0x5   :  { %12 = sfence }
   0x6   :  { %13 = vsyncpa [#allocation6], 0 }
   0x7   :  { %15 = vsyncpa [#allocation6 + $0x1], 0 }
   0x8   :  { %16 = vsyncpa [#allocation9], 0 }
   0x9   :  { %18 = vsyncpa [#allocation9 + $0x1], 0 }
   0xa   :  { %19 = vsyncpa [#allocation7], 0 }
   0xb   :  { %21 = vsyncpa [#allocation7 + $0x1], 0  ;;  %s914_s18 = smov 0   ;;  %s916_s19 = smov 0  }
   0xc   :  { %s918_s20 = smov 0   ;;  %s920_s21 = smov 0  }
   0xd   :  { %s922_s22 = smov 0   ;;  %s924_s0 = smov 0  }
   0xe   :  { %s926_s23 = smov 0   ;;  %s928_s24 = smov 0  }
   0xf   :  { %s930_s25 = smov 0  }
  0x10 LB: > { %s560_s26 = sadd.s32 4294967295, %s876_s25   ;;  %s561_s27 = sadd.s32 4294967294, %s876_s25   ;;  %s876_s25 = sphi %s930_s25, %s27_s25   ;;  %s872_s24 = sphi %s928_s24, %s1240_s24   ;;  %s868_s23 = sphi %s926_s23, %s1239_s23   ;;  %s864_s0 = sphi %s924_s0, %s1238_s0   ;;  %s860_s22 = sphi %s922_s22, %s1237_s22   ;;  %s856_s21 = sphi %s920_s21, %s1236_s21   ;;  %s852_s20 = sphi %s918_s20, %s1235_s20   ;;  %s848_s19 = sphi %s916_s19, %s1234_s19   ;;  %s844_s18 = sphi %s914_s18, %s1233_s18  }
  0x11   : > { %s46_s28 = sadd.s32 1, %s872_s24  ;;  %s55_s29 = sadd.s32 1, %s864_s0 }
  0x12   : > { %p48_p0 = scmp.ge.s32.totalorder %s46_s28, 2  ;;  %p62_p1 = scmp.ne.s32.totalorder %s864_s0, %s860_s22 }
  0x13   : > { %p1203_p2 = scmp.eq.s32.totalorder %s876_s25, 0  ;;  %p68_p3 = scmp.ne.s32.totalorder %s860_s22, %s856_s21 }
  0x14   : > { %s1242_s28 = smov (%p48_p0, %s46_s28), 0  ;;  %p979_p5 = scmp.eq.s32.totalorder %s560_s26, 0 }
  0x15   : > { %1210 = sst [smem:[#allocation17_spill]] %s1242_s28  ;;  %p975_p4 = por %p1203_p2, %p62_p1 }
  0x16   : > { %s50_s6 = ssub.s32 %s872_s24, %s1242_s28  ;;  %s986_s7 = sld [smem:[#allocation4 + %s872_s24]] }
  0x17   : > { %p53_p6 = scmp.eq.s32.totalorder %s50_s6, 0  ;;  %p993_p7 = por %p979_p5, %p68_p3 }
  0x18   : > { %s998_s9 = sld [smem:[#allocation4 + %s1242_s28]]  ;;  %p156_p8 = scmp.eq.s32.totalorder %s560_s26, 1 }
  0x19   : > { %s1213_s8 = scalar_select %p993_p7, 1, 0 }
  0x1a   : > { %s1001_s10 = scalar_select %p53_p6, %s864_s0, %s55_s29  }
  0x1b   : > { %p1006_p9 = por %p156_p8, %p62_p1  ;;  %p162_p10 = scmp.eq.s32.totalorder %s561_s27, 1 }
  0x1c   : > { %1214 = sst [smem:[#allocation18_spill]] %s1001_s10  ;;  %p623_p12 = scmp.lt.s32.totalorder %s876_s25, 2 }
  0x1d   : > { %s1215_s11 = scalar_select %p1006_p9, 1, 0 }
  0x1e   : > { %p1015_p13 = por %p162_p10, %p68_p3  ;;  %s182_s13 = sand.u32 1, %s864_s0  }
  0x1f   : > { %s564_s14 = sshll.u32 %s182_s13, 4  ;;  %s582_s15 = sshll.u32 %s872_s24, 8 }
  0x20   : > { %s1216_s12 = scalar_select %p1015_p13, 1, 0 }
  0x21   : > { %s1217_s1 = sld [smem:[#allocation19_spill]]  ;;  %s186_s29 = scalar_lea.vmem [#allocation5], %s564_s14 }
  0x22   : > { %s194_s6 = sshll.u32 %s186_s29, 4  ;;  %p1028_p0 = pnand %p623_p12, %p975_p4  ;;  %s195_s6 = int_to_ptr.vmem [resolvable:$true] %s194_s6 }
  0x23   : > { %p570_p1 = scmp.ge.s32.totalorder %s876_s25, 1  ;;  %s183_s28 = scalar_lea.sflag [#allocation6], %s182_s13 }
  0x24   : > { %p712_p3 = pneg %p1028_p0  ;;  %s723_s10 = scalar_lea.vmem %s195_s6, 256 }
  0x25   : > { %p724_p6 = scmp.ne.s32.totalorder %s195_s6, %s723_s10  ;;  %s879_s16 = smov [#allocation5]  }
  0x27   : > { %s193_s26 = scalar_lea.hbm %s1217_s1, %s582_s15  ;;  %p726_p8 = pnand %p724_p6, %p712_p3 }
  0x28   : > { %s728_s15 = sshll.u32 %s879_s16, 4  ;;  %s729_s15 = int_to_ptr.vmem [resolvable:$false] %s728_s15 }
  0x29   : > { %p727_p10 = pneg %p726_p8  ;;  %s730_s14 = scalar_lea.vmem %s729_s15, 512 }
  0x2a   : > { %p731_p11 = scmp.lt.s32.totalorder %s195_s6, %s729_s15  ;;  %p732_p2 = scmp.lt.s32.totalorder %s730_s14, %s723_s10 }
  0x2c   : > { %p733_p13 = por %p732_p2, %p731_p11 }
  0x2e   : > { %p734_p4 = pnand %p733_p13, %p727_p10 }
  0x30   : > { %737 = shalt.err (!%p734_p4)
}
  0x31   : > { %s1204_s30 = smov 128   ;;  %s1205_s10 = smov 8  }
  0x32   : > { %613 = dma.hbm_to_vmem [thread:$0]  (!%p1028_p0), %s193_s26, 256, %s195_s6, %s183_s28, %s1204_s30, %s1204_s30, %s1205_s10  }
  0x33   : > { %p238_p2 = scmp.lt.s32.totalorder %s876_s25, 3  ;;  %s80_s17 = ssub.s32 %s986_s7, %s998_s9 }
  0x34   : > { %s87_s29 = sadd.s32 1, %s852_s20  ;;  %p85_p13 = scmp.eq.s32.totalorder %s80_s17, 0 }
  0x35   : > { %p1043_p11 = pnand %p570_p1, %p238_p2  ;;  %p94_p3 = scmp.ne.s32.totalorder %s852_s20, %s848_s19 }
  0x36   : > { %p100_p6 = scmp.ne.s32.totalorder %s848_s19, %s844_s18  ;;  %s204_s16 = sand.u32 1, %s852_s20  }
  0x37   : > { %s1219_s13 = scalar_select %p1043_p11, 1, 0 }
  0x38   : > { %s1056_s27 = scalar_select %p85_p13, %s852_s20, %s87_s29  }
  0x39   : > { %p1220_p8 = scmp.eq.s32.totalorder %s876_s25, 0  ;;  %p1062_p0 = por %p100_p6, %p979_p5 }
  0x3a   : > { %s567_s26 = sshll.u32 %s204_s16, 5  ;;  %s1084_s10 = scalar_lea.sflag [#allocation9], %s204_s16 }
  0x3b   : > { %p96_p10 = por %p94_p3, %p1220_p8  ;;  %s208_s15 = scalar_lea.vmem [#allocation8], %s567_s26 }
  0x3c   : > { %s1221_s28 = scalar_select %p1062_p0, 1, 0 }
  0x3d   : > { %p1068_p1 = pnand %p623_p12, %p96_p10  ;;  %s219_s5 = sshll.u32 %s208_s15, 4  ;;  %s1077_s5 = int_to_ptr.vmem [resolvable:$true] %s219_s5 }
  0x3e   : > { %s603_s7 = scalar_select %p96_p10, [#allocation4], [#allocation11] }
  0x3f   : > { %s604_s9 = scalar_select %p96_p10, %s872_s24, 0 }
  0x40   : > { %s1244_s7 = smov (!%p623_p12, %s603_s7), [#allocation12] }
  0x41   : > { %s1246_s9 = smov (!%p623_p12, %s604_s9), 0  ;;  %p740_p12 = pneg %p1068_p1 }
  0x42   : > { %s209_s18 = sld [smem:[%s1244_s7 + %s1246_s9]]  ;;  %s743_s9 = scalar_lea.hbm %s1199_s2, 2048 }
  0x48   : > { %s583_s14 = sshll.u32 %s209_s18, 9 }
  0x49   : > { %s1082_s30 = scalar_lea.hbm %s1199_s2, %s583_s14 }
  0x4a   : > { %s738_s1 = scalar_lea.hbm %s1082_s30, 512  ;;  %p744_p13 = scmp.lt.s32.totalorder %s1082_s30, %s1199_s2 }
  0x4b   : > { %p739_p5 = scmp.ne.s32.totalorder %s1082_s30, %s738_s1  ;;  %p745_p3 = scmp.lt.s32.totalorder %s743_s9, %s738_s1 }
  0x4d   : > { %p741_p4 = pnand %p740_p12, %p739_p5  ;;  %p746_p6 = por %p745_p3, %p744_p13 }
  0x4f   : > { %p742_p2 = pneg %p741_p4 }
  0x51   : > { %p747_p8 = pnand %p746_p6, %p742_p2 }
  0x53   : > { %750 = shalt.err (!%p747_p8)
}
  0x54   : > { %s751_s16 = scalar_lea.vmem %s1077_s5, 512  ;;  %s882_s14 = smov [#allocation8]  }
  0x55   : > { %p752_p10 = scmp.ne.s32.totalorder %s1077_s5, %s751_s16  ;;  %s756_s17 = sshll.u32 %s882_s14, 4  ;;  %s757_s17 = int_to_ptr.vmem [resolvable:$false] %s756_s17 }
  0x56   : > { %s758_s29 = scalar_lea.vmem %s757_s17, 1024  ;;  %p759_p4 = scmp.lt.s32.totalorder %s1077_s5, %s757_s17 }
  0x57   : > { %p754_p9 = pnand %p752_p10, %p740_p12  ;;  %p760_p0 = scmp.lt.s32.totalorder %s758_s29, %s751_s16 }
  0x59   : > { %p755_p5 = pneg %p754_p9  ;;  %p761_p7 = por %p760_p0, %p759_p4 }
  0x5b   : > { %p762_p11 = pnand %p761_p7, %p755_p5 }
  0x5d   : > { %765 = shalt.err (!%p762_p11)
}
  0x5e   : > { %s1223_s1 = smov 8   ;;  %s1224_s26 = smov 128  }
  0x5f   : > { %618 = dma.hbm_to_vmem [thread:$0]  (!%p1068_p1), %s1082_s30, 512, %s1077_s5, %s1084_s10, %s1224_s26, %s1224_s26, %s1223_s1  }
  0x60   : > { %p1225_p9 = scmp.ne.s32.totalorder %s1219_s13, 0 }
  0x61   : > { %s1111_s7 = sand.u32 (!%p1225_p9), 1, %s860_s22   ;;  %p1226_p7 = scmp.ne.s32.totalorder (!%p1225_p9), %s1213_s8, 0 }
  0x62   : > { %242 = sbr.rel (%p1225_p9) target bundleno = 328 (0x148), region = 32  ;;  %s571_s9 = sshll.u32 (!%p1225_p9), %s1111_s7, 4 }
  0x63   : > { %s245_s18 = scalar_lea.sflag (!%p1225_p9), [#allocation6], %s1111_s7  ;;  %s248_s6 = scalar_lea.vmem (!%p1225_p9), [#allocation5], %s571_s9 }
  0x67   : > { %831 = dma.done.wait (%p1226_p7), %s245_s18, 256  }
  0x68   : > { %833 = vsyncadd (%p1226_p7), %s245_s18, 4294967040  ;;  %s253_s30 = sand.u32 1, %s848_s19   ;;  %p1227_p11 = scmp.ne.s32.totalorder %s1221_s28, 0 }
  0x69   : > { %s572_s10 = sshll.u32 %s253_s30, 5  ;;  %s254_s13 = scalar_lea.sflag [#allocation9], %s253_s30 }
  0x6a   : > { %s257_s5 = scalar_lea.vmem [#allocation8], %s572_s10 }
  0x6b   : > { %835 = dma.done.wait (%p1227_p11), %s254_s13, 512  }
  0x6c   : > { %837 = vsyncadd (%p1227_p11), %s254_s13, 4294966784  ;;  %vm316_vm0 = vcmask 261120   ;;  %v315_v0 = vld [vmem:[%s257_s5 + $0x18] sm:$0xff]  ;;  %v314_v1 = vld [vmem:[%s257_s5 + $0x10] sm:$0xff]  ;;  %s294_s8 = sld [smem:[#allocation4 + %s868_s23]]  ;;  %s291_s14 = scalar_lea.vmem [#allocation10], %s571_s9 }
  0x6d   : > { %591 = vmatprep.subr.mxu0 %v315_v0  ;;  %v310_v2 = vld [vmem:[%s248_s6] sm:$0xff]  ;;  %v313_v3 = vld [vmem:[%s257_s5 + $0x8] sm:$0xff]  ;;  %s433_s17 = sshll.u32 %s291_s14, 4  ;;  %s584_s29 = sshll.u32 %s868_s23, 8  ;;  %s1135_s17 = int_to_ptr.vmem [resolvable:$true] %s433_s17 }
  0x6e   : > { %592 = vmatpush3.msra.mxu0 %v315_v0  ;;  %599 = vmatprep.mubr.msk.f32.mxu0 %vm316_vm0, %v310_v2  ;;  %v312_v4 = vld [vmem:[%s257_s5] sm:$0xff]  ;;  %v311_v5 = vld [vmem:[%s248_s6 + $0x8] sm:$0xff]  ;;  %s1140_s18 = scalar_lea.hbm %s1201_s4, %s584_s29  ;;  %s419_s6 = scalar_lea.sflag [#allocation7], %s1111_s7 }
  0x6f   : > { %593 = vmatprep.subr.mxu0 %v314_v1  ;;  %s766_s9 = scalar_lea.vmem %s1135_s17, 256  ;;  %p1228_p12 = scmp.ne.s32.totalorder %s1215_s11, 0 }
  0x70   : > { %594 = vmatpush3.msra.mxu0 %v314_v1  ;;  %p767_p1 = scmp.ne.s32.totalorder %s1135_s17, %s766_s9  ;;  %s883_s23 = smov [#allocation10]  }
  0x71   : > { %595 = vmatprep.subr.mxu0 %v313_v3  ;;  %s770_s30 = sshll.u32 %s883_s23, 4  ;;  %s771_s30 = int_to_ptr.vmem [resolvable:$false] %s770_s30 }
  0x72   : > { %596 = vmatpush3.msra.mxu0 %v313_v3  ;;  %p295_p0 = scmp.lt.s32.totalorder %s294_s8, 3  ;;  %p768_p2 = pnand %p767_p1, %p1228_p12 }
  0x73   : > { %597 = vmatprep.subr.mxu0 %v312_v4  ;;  %s772_s10 = scalar_lea.vmem %s771_s30, 512  ;;  %p773_p3 = scmp.lt.s32.totalorder %s1135_s17, %s771_s30 }
  0x74   : > { %598 = vmatpush3.msra.mxu0 %v312_v4  ;;  %s1248_s8 = smov (!%p295_p0, %s294_s8), 3  ;;  %p769_p13 = pneg %p768_p2 }
  0x75   : > { %600 = vmatmul.mubr.msk.f32.vlgmr.msra.gmra.mxu0 %vm316_vm0, %v311_v5  ;;  %s300_s16 = scalar_lea.vmem %s1200_s3, %s1248_s8  ;;  %p774_p6 = scmp.lt.s32.totalorder %s772_s10, %s766_s9 }
  0x76   : > { %v576_v6 = vld [vmem:[%s300_s16] ss:$0 sm:$0xff] }
  0x77   : > { %p775_p8 = por %p774_p6, %p773_p3 }
  0x79   : > { %p776_p10 = pnand %p775_p8, %p769_p13 }
 0x135   : > { %v601_v7 = vpop.f32.mrf.mxu0 }
 0x136   : > { %v415_v8 = vadd.f32 %v601_v7, %v576_v6 }
 0x137   : > { %v389_v9 = vpop.f32.mrf.mxu0 }
 0x138   : > { %417 = vst [vmem:[%s291_s14 + $0x8] sm:$0xff] %v415_v8  ;;  %v414_v10 = vadd.f32 %v576_v6, %v389_v9 }
 0x13a   : > { %416 = vst [vmem:[%s291_s14] sm:$0xff] %v414_v10 }
 0x13b   : > { %779 = shalt.err (!%p776_p10)
}
 0x13c   : > { %s780_s13 = scalar_lea.hbm %s1140_s18, 256  ;;  %s784_s28 = scalar_lea.hbm %s1201_s4, 512 }
 0x13d   : > { %p781_p5 = scmp.ne.s32.totalorder %s1140_s18, %s780_s13  ;;  %p785_p7 = scmp.lt.s32.totalorder %s1140_s18, %s1201_s4 }
 0x13e   : > { %p786_p11 = scmp.lt.s32.totalorder %s784_s28, %s780_s13 }
 0x13f   : > { %p782_p4 = pnand %p781_p5, %p1228_p12 }
 0x140   : > { %p787_p0 = por %p786_p11, %p785_p7 }
 0x141   : > { %p783_p9 = pneg %p782_p4 }
 0x143   : > { %p788_p1 = pnand %p787_p0, %p783_p9 }
 0x145   : > { %791 = shalt.err (!%p788_p1)
}
 0x146   : > { %s884_s14 = smov 128   ;;  %s885_s29 = smov 8  }
 0x147   : > { %608 = dma.vmem_to_hbm [thread:$0]  (%p1228_p12), %s1135_s17, 256, %s1140_s18, %s419_s6, %s884_s14, %s884_s14, %s885_s29  }
 0x148 PF: > { %s448_s1 = sand.u32 1, %s856_s21   ;;  %p1229_p2 = scmp.ne.s32.totalorder %s1216_s12, 0 }
 0x149   : > { %p1230_p13 = scmp.ge.s32.totalorder %s876_s25, 2  ;;  %s449_s26 = scalar_lea.sflag [#allocation7], %s448_s1 }
 0x14b   : > { %p620_p3 = pnand %p1230_p13, %p1229_p2 }
 0x14d   : > { %p621_p6 = pneg %p620_p3 }
 0x14f   : > { %839 = dma.done.wait (%p621_p6), %s449_s26, 256  }
 0x150   : > { %841 = vsyncadd (%p621_p6), %s449_s26, 4294967040  ;;  %s27_s25 = sadd.s32 1, %s876_s25   ;;  %s1231_s11 = sld [smem:[#allocation18_spill]] }
 0x151   : > { %p24_p8 = scmp.ge.s32.totalorder %s27_s25, 4   ;;  %s1232_s7 = sld [smem:[#allocation17_spill]] }
 0x152   : > { %s1233_s18 = smov %s848_s19  ;;  %s1234_s19 = smov %s852_s20 }
 0x153   : > { %s1235_s20 = smov %s1056_s27  ;;  %s1236_s21 = smov %s860_s22 }
 0x154   : > { %s1237_s22 = smov %s864_s0  ;;  %s1239_s23 = smov %s872_s24 }
 0x155   :  { %26 = sbr.rel (!%p24_p8) target bundleno = 16 (0x10), region = 101 }
 0x156   : > { %s1238_s0 = smov %s1231_s11 }
 0x157   : > { %s1240_s24 = smov %s1232_s7 }
 0x15a   :  { %454 = vsyncpa [#allocation6], 1 }
 0x15b   :  { %456 = vsyncpa [#allocation6 + $0x1], 1 }
 0x15c   :  { %457 = vsyncpa [#allocation9], 1 }
 0x15d   :  { %459 = vsyncpa [#allocation9 + $0x1], 1 }
 0x15e   :  { %460 = vsyncpa [#allocation7], 1 }
 0x15f   :  { %462 = vsyncpa [#allocation7 + $0x1], 1 }

</bundles_post_ra>
